<compile_context>
chip_gen: v6e
topology: v6e:2x2x1
jax: 0.10.0
libtpu: 0.0.40
codegen_flags: <defaults>
</compile_context>

<pallas_src>
import math

import jax
import jax.numpy as jnp
from jax.experimental import pallas as pl
from jax.experimental.pallas import tpu as pltpu


def _encoder_kernel(x_ref, w_ref, b_ref, out_ref):
    """Grid = (n_steps,) over row tiles of the flattened (B*T, P) input.

    x_ref:   (rows_tile, P)  bf16  view-summed patch rows
    w_ref:   (P, D)          bf16  patch-embed weight, pre-scaled by 1/V
    b_ref:   (1, D)          f32   patch-embed bias
    out_ref: (rows_tile, D)         output row tile
    """
    tok = jnp.dot(x_ref[...], w_ref[...], preferred_element_type=jnp.float32)
    out_ref[...] = (tok + b_ref[...]).astype(out_ref.dtype)


def prepare_encoder_params(w, b, num_views):
    """One-time (init-time) constant prep: fold the 1/V view-mean scale into
    the weight, cast the MXU operand to bf16, keep the bias in f32 as (1, D).
    """
    w_prep = (w.astype(jnp.float32) / float(num_views)).astype(jnp.bfloat16)
    b_prep = b.astype(jnp.float32).reshape(1, -1)
    return w_prep, b_prep


def encoder_forward(x, w_prep, b_prep, patch=2, out_dtype=jnp.float32):
    """x: (B, V, C, H, W) float32.  Returns (B, H//patch, W//patch, D).

    w_prep / b_prep come from `prepare_encoder_params` (constants, prepared
    once, NOT per call).
    """
    B, V, C, H, W = x.shape
    ph = pw = patch
    assert H % ph == 0 and W % pw == 0, "spatial dims must be divisible by patch"
    hh, ww = H // ph, W // pw
    T = hh * ww
    P = C * ph * pw
    D = w_prep.shape[1]
    assert w_prep.shape[0] == P and b_prep.shape == (1, D)

    # --- fused wrapper glue -------------------------------------------------
    # Linearity hoist: sum over views (1/V is folded into w_prep), cast to
    # bf16 BEFORE the patchify transpose so the transpose moves bf16 bytes,
    # then flatten to (B*T, P) token rows.
    xs = jnp.sum(x, axis=1).astype(jnp.bfloat16)                    # (B, C, H, W)
    xp = xs.reshape(B, C, hh, ph, ww, pw)
    xp = jnp.transpose(xp, (0, 2, 4, 1, 3, 5)).reshape(B * T, P)    # (rows, P)

    # Row tiling: big tiles to amortize per-step overhead, but keep >= 2
    # "parallel" grid steps so v7x's two TensorCores are both used.
    rows = B * T
    n_steps = max(2, math.ceil(rows / 512))
    rows_tile = ((math.ceil(rows / n_steps) + 7) // 8) * 8          # sublane-aligned
    rows_padded = rows_tile * n_steps
    if rows_padded != rows:
        xp = jnp.pad(xp, ((0, rows_padded - rows), (0, 0)))

    out = pl.pallas_call(
        _encoder_kernel,
        out_shape=jax.ShapeDtypeStruct((rows_padded, D), out_dtype),
        grid_spec=pltpu.PrefetchScalarGridSpec(
            num_scalar_prefetch=0,
            grid=(n_steps,),
            in_specs=[
                pl.BlockSpec((rows_tile, P), lambda i: (i, 0)),
                pl.BlockSpec((P, D), lambda i: (0, 0)),
                pl.BlockSpec((1, D), lambda i: (0, 0)),
            ],
            out_specs=pl.BlockSpec((rows_tile, D), lambda i: (i, 0)),
        ),
        compiler_params=pltpu.CompilerParams(
            dimension_semantics=("parallel",)),
    )(xp, w_prep, b_prep)

    # Drop row padding, rearrange '(b h w) d -> b h w d' with h=w=7-style grid.
    return out[:rows].reshape(B, hh, ww, D)


def _reference(x, w, b, patch=2):
    """Pure-JAX f32 reference: per-view projection then mean over views."""
    B, V, C, H, W = x.shape
    ph = pw = patch
    hh, ww = H // ph, W // pw
    T = hh * ww
    P = C * ph * pw
    xp = x.reshape(B, V, C, hh, ph, ww, pw)
    xp = jnp.transpose(xp, (0, 1, 3, 5, 2, 4, 6)).reshape(B, V, T, P)
    tok = jnp.einsum("bvtp,pd->bvtd", xp, w) + b   # (B, V, T, D)
    tok = tok.mean(axis=1)                         # mean over views
    return tok.reshape(B, hh, ww, w.shape[1])


if __name__ == "__main__":
    key = jax.random.PRNGKey(0)
    B, V, C, H, W = 2, 3, 4, 14, 14   # small shapes; 14/2 = 7 -> 7x7 tokens
    PATCH, D = 2, 64
    P = C * PATCH * PATCH

    kx, kw, kb = jax.random.split(key, 3)
    x = jax.random.normal(kx, (B, V, C, H, W), dtype=jnp.float32)
    w = jax.random.normal(kw, (P, D), dtype=jnp.float32) * 0.05
    b = jax.random.normal(kb, (D,), dtype=jnp.float32) * 0.01

    # Constant prep done once, outside the per-forward path.
    w_prep, b_prep = prepare_encoder_params(w, b, num_views=V)

    out = encoder_forward(x, w_prep, b_prep, patch=PATCH)
    out = jax.block_until_ready(out)

    ref = _reference(x, w, b, patch=PATCH)
    assert out.shape == (B, H // PATCH, W // PATCH, D), out.shape
    # bf16 MXU operands -> loosened tolerance vs f32 reference.
    assert jnp.allclose(out, ref, atol=2e-2, rtol=2e-2), "mismatch vs reference"

    print("KERNEL_OK")
</pallas_src>

<mosaic_0001>
module attributes {stable_mosaic.version = 11 : i64} {
  func.func @_encoder_kernel(%arg0: i32, %arg1: memref<56x16xbf16, #tpu.memory_space<vmem>>, %arg2: memref<16x64xbf16, #tpu.memory_space<vmem>>, %arg3: memref<1x64xf32, #tpu.memory_space<vmem>>, %arg4: memref<56x64xf32, #tpu.memory_space<vmem>>) attributes {dimension_semantics = [#tpu.dimension_semantics<parallel>], iteration_bounds = array<i64: 2>, scalar_prefetch = 0 : i64, scratch_operands = 0 : i64, tpu.core_type = #tpu.core_type<tc>, window_params = [{transform_indices = @transform_0, window_bounds = array<i64: 56, 16>}, {pipeline_mode = #tpu.pipeline_mode<synchronous>, transform_indices = @transform_1, window_bounds = array<i64: 16, 64>}, {pipeline_mode = #tpu.pipeline_mode<synchronous>, transform_indices = @transform_2, window_bounds = array<i64: 1, 64>}, {transform_indices = @transform_3, window_bounds = array<i64: 56, 64>}]} {
    %c0 = arith.constant 0 : index
    %c0_0 = arith.constant 0 : index
    %0 = vector.load %arg1[%c0, %c0_0] : memref<56x16xbf16, #tpu.memory_space<vmem>>, vector<56x16xbf16>
    %c0_1 = arith.constant 0 : index
    %c0_2 = arith.constant 0 : index
    %1 = vector.load %arg2[%c0_1, %c0_2] : memref<16x64xbf16, #tpu.memory_space<vmem>>, vector<16x64xbf16>
    %cst = arith.constant dense<0.000000e+00> : vector<56x64xf32>
    %2 = tpu.matmul %0, %1, %cst {dimension_numbers = #tpu.dot_dimension_numbers<[1], [0], [0], [1], [0, 0, 1, 1], [], []>} : vector<56x16xbf16>, vector<16x64xbf16>, vector<56x64xf32> -> vector<56x64xf32>
    %c0_3 = arith.constant 0 : index
    %c0_4 = arith.constant 0 : index
    %3 = vector.load %arg3[%c0_3, %c0_4] : memref<1x64xf32, #tpu.memory_space<vmem>>, vector<1x64xf32>
    %4 = vector.broadcast %3 : vector<1x64xf32> to vector<56x64xf32>
    %5 = arith.addf %2, %4 : vector<56x64xf32>
    %c0_5 = arith.constant 0 : index
    %c0_6 = arith.constant 0 : index
    %6 = vector.load %arg4[%c0_5, %c0_6] : memref<56x64xf32, #tpu.memory_space<vmem>>, vector<56x64xf32>
    tpu.vector_store %arg4[%c0_5, %c0_6], %5 {strides = array<i32>} : memref<56x64xf32, #tpu.memory_space<vmem>>, vector<56x64xf32>,
    return
  }
  func.func @transform_0(%arg0: i32) -> (i32, i32) {
    %c0_i32 = arith.constant 0 : i32
    %c0_i32_0 = arith.constant 0 : i32
    return %arg0, %c0_i32 : i32, i32
  }
  func.func @transform_1(%arg0: i32) -> (i32, i32) {
    %c0_i32 = arith.constant 0 : i32
    %c0_i32_0 = arith.constant 0 : i32
    %c0_i32_1 = arith.constant 0 : i32
    return %c0_i32, %c0_i32_0 : i32, i32
  }
  func.func @transform_2(%arg0: i32) -> (i32, i32) {
    %c0_i32 = arith.constant 0 : i32
    %c0_i32_0 = arith.constant 0 : i32
    %c0_i32_1 = arith.constant 0 : i32
    return %c0_i32, %c0_i32_0 : i32, i32
  }
  func.func @transform_3(%arg0: i32) -> (i32, i32) {
    %c0_i32 = arith.constant 0 : i32
    %c0_i32_0 = arith.constant 0 : i32
    return %arg0, %c0_i32 : i32, i32
  }
}

</mosaic_0001>

<bundles_post_ra>
// kernel: tpu_custom_call.1
= control target key start
LH: loop header
LB: loop body
LE: loop exit
PB: predicated region body
PF: predicated region fallthrough
CT: control target
= control target key end

     0   :  { %s433_s12 = smov 0   ;;  %s463_s0 = inlined_call_operand.vmem [shape: bf16[112,16], index: 0, kind: input, shape index: {}]   ;;  %s464_s1 = inlined_call_operand.vmem [shape: bf16[16,64], index: 1, kind: input, shape index: {}]   ;;  %s465_s2 = inlined_call_operand.vmem [shape: f32[1,64], index: 2, kind: input, shape index: {}]   ;;  %s466_s3 = inlined_call_operand.vmem [shape: f32[112,64], index: 3, kind: output, shape index: {}]  }
   0x1 LB: > { %s356_s13 = sadd.s32 4294967295, %s411_s12   ;;  %p360_p0 = scmp.ge.s32.totalorder %s411_s12, 1  ;;  %s411_s12 = sphi %s433_s12, %s13_s12  }
   0x2   : > { %p138_p1 = scmp.lt.s32.totalorder %s411_s12, 3 }
   0x4   : > { %p139_p2 = pnand %p360_p0, %p138_p1 }
   0x5   : > { %s162_s16 = smul.u32 (!%p139_p2), 7, %s356_s13 }
   0x6   : > { %142 = sbr.rel (%p139_p2) target bundleno = 218 (0xda), region = 32 }
   0x7   : > { %p163_p3 = scmp.lt.s32.totalorder (!%p139_p2), %s162_s16, 13 }
   0xb   : > { %v400_v0 = vld [vmem:[%s464_s1] sm:$0xff]   ;;  %s468_s16 = smov (!%p163_p3, %s162_s16), 13  ;;  %vm215_vm0 = vcmask 130048   ;;  %vm292_vm1 = vcmask 523264  }
   0xc   : > { %380 = vmatprep.subr.bf16.mxu0 %v400_v0  ;;  %390 = vmatprep.subr.bf16.mxu1 %v400_v0  ;;  %s361_s17 = sshll.u32 %s468_s16, 2  ;;  %s362_s21 = sshll.u32 %s468_s16, 3  ;;  %v363_v5 = vld [vmem:[%s465_s2] ss:$0 sm:$0xff] }
   0xd   : > { %381 = vmatpush3.bf16.msra.mxu0 %v400_v0  ;;  %391 = vmatpush3.bf16.msra.mxu1 %v400_v0  ;;  %s166_s20 = scalar_lea.vmem %s463_s0, %s361_s17  ;;  %s172_s26 = scalar_lea.vmem %s466_s3, %s362_s21 }
   0xe   : > { %v401_v1 = vld [vmem:[%s166_s20] sm:$0xff]   ;;  %v402_v2 = vld [vmem:[%s166_s20 + $0x10] sm:$0xff]   ;;  %v403_v3 = vld [vmem:[%s166_s20 + $0x8] sm:$0xff]  }
   0xf   : > { %382 = vmatprep.mubr.msk.bf16.mxu0 %vm215_vm0, %v401_v1  ;;  %386 = vmatprep.mubr.msk.bf16.mxu1 %vm215_vm0, %v402_v2  ;;  %v404_v4 = vld [vmem:[%s166_s20 + $0x18] ss:$0 sps:$4 sm:$0xff]  }
  0x10   : > { %383 = vmatmul.mubr.msk.bf16.vlgmr.msra.gmra.mxu0 %vm215_vm0, %v403_v3  ;;  %387 = vmatmul.mubr.msk.bf16.vlgmr.msra.gmra.mxu1 %vm215_vm0, %v404_v4 }
  0xd0   : > { %v384_v6 = vpop.f32.mrf.mxu0  ;;  %v388_v8 = vpop.f32.mrf.mxu1 }
  0xd1   : > { %v271_v7 = vadd.f32 %v384_v6, %v363_v5  ;;  %v287_v9 = vadd.f32 %v388_v8, %v363_v5 }
  0xd2   : > { %v262_v10 = vpop.f32.mrf.mxu0  ;;  %v278_v12 = vpop.f32.mrf.mxu1 }
  0xd3   : > { %295 = vst.msk [vmem:[%s172_s26 + $0x10] sm:$0xff] %vm292_vm1, %v271_v7  ;;  %v263_v11 = vadd.f32 %v363_v5, %v262_v10  ;;  %299 = vst.msk [vmem:[%s172_s26 + $0x30] sm:$0xff] %vm292_vm1, %v287_v9  ;;  %v279_v13 = vadd.f32 %v363_v5, %v278_v12 }
  0xd4   : > { %v385_v14 = vpop.f32.mrf.mxu0  ;;  %v389_v16 = vpop.f32.mrf.mxu1 }
  0xd5   : > { %293 = vst.msk [vmem:[%s172_s26] sm:$0xff] %vm292_vm1, %v263_v11  ;;  %v274_v15 = vadd.f32 %v385_v14, %v363_v5  ;;  %297 = vst.msk [vmem:[%s172_s26 + $0x20] sm:$0xff] %vm292_vm1, %v279_v13 }
  0xd6   : > { %v265_v17 = vpop.f32.mrf.mxu0  ;;  %v281_v19 = vpop.f32.mrf.mxu1 }
  0xd7   : > { %296 = vst.msk [vmem:[%s172_s26 + $0x18] sm:$0xff] %vm292_vm1, %v274_v15  ;;  %v266_v18 = vadd.f32 %v363_v5, %v265_v17  ;;  %v282_v20 = vadd.f32 %v363_v5, %v281_v19 }
  0xd9   : > { %294 = vst.msk [vmem:[%s172_s26 + $0x8] sm:$0xff] %vm292_vm1, %v266_v18  ;;  %298 = vst.msk [vmem:[%s172_s26 + $0x28] sm:$0xff] %vm292_vm1, %v282_v20 }
  0xda PF: > { %s13_s12 = sadd.s32 1, %s411_s12  }
  0xdb   : > { %p10_p4 = scmp.ge.s32.totalorder %s13_s12, 4  }
  0xdd   :  { %12 = sbr.rel (!%p10_p4) target bundleno = 1 (0x1), region = 62 }

</bundles_post_ra>
